<compile_context>
chip_gen: v6e
topology: v6e:2x2x1
jax: 0.10.0
libtpu: 0.0.40
codegen_flags: <defaults>
</compile_context>

<pallas_src>
import functools

import jax
import jax.numpy as jnp
from jax.experimental import pallas as pl
from jax.experimental.pallas import tpu as pltpu

_LANE = 128
_MIB = 1024 * 1024


def _normalize_kernel(mean_ref, inv_std_ref, x_ref, o_ref, *, block_rows, sliced):
    """out = (x - mean_row) * inv_std_row on one (block_rows, L) tile.

    mean_ref / inv_std_ref are grid-resident (rows_pad, 1) columns.  When the
    row axis is blocked (`sliced`), the current R-row window is selected with
    a sublane-aligned dynamic slice (no per-step constant DMA).
    """
    if sliced:
        start = pl.multiple_of(pl.program_id(0) * block_rows, 8)
        m = mean_ref[pl.ds(start, block_rows), :]
        s = inv_std_ref[pl.ds(start, block_rows), :]
    else:
        m = mean_ref[...]
        s = inv_std_ref[...]
    o_ref[...] = (x_ref[...] - m) * s


def _default_tile_bytes():
    # v6e/v7x: fast HBM + 32 MiB default scoped VMEM -> 4 MiB tiles amortize
    # the ~0.35 us/step pipeline overhead.  v5e (16 MiB scoped VMEM) and any
    # unknown device: stay at 2 MiB (4 double-buffered tiles = 8 MiB).
    try:
        kind = jax.devices()[0].device_kind.lower()
    except Exception:
        return 2 * _MIB
    if "v6" in kind or "v7" in kind:
        return 4 * _MIB
    return 2 * _MIB


def _pick_tiles(rows, hw, itemsize, target_tile_bytes):
    """Choose (R, L, sub): row block, lane block, sublane packing."""
    # Native sublane packing: 8 rows/vreg for 32-bit, 16 for 16-bit, 32 for 8-bit.
    sub = {4: 8, 2: 16, 1: 32}.get(itemsize, 8)
    target_elems = max(1, target_tile_bytes // itemsize)

    rows_fit = target_elems // hw          # full-width rows that fit one tile
    if rows_fit >= rows:
        return rows, hw, sub               # whole array is a single block
    if rows_fit >= sub:
        return (rows_fit // sub) * sub, hw, sub
    # One sub-row full-width strip already exceeds the target: block lanes too.
    r = rows if rows <= sub else sub
    lanes = max(_LANE, (target_elems // r // _LANE) * _LANE)
    lanes = min(lanes, hw)
    if lanes < hw:
        lanes = (lanes // _LANE) * _LANE   # block < full dim must be 128-aligned
    return r, lanes, sub


def normalize(x, mean, std, *, target_tile_bytes=None, donate_x=False):
    """NCHW per-channel normalize: (x - mean[:, None, None]) / std[:, None, None]."""
    N, C, H, W = x.shape
    rows, hw = N * C, H * W
    dtype = x.dtype
    itemsize = jnp.dtype(dtype).itemsize
    if target_tile_bytes is None:
        target_tile_bytes = _default_tile_bytes()

    # Exact reciprocal computed once in the wrapper (hot path: VPU multiply).
    mean = jnp.asarray(mean, dtype=dtype)
    inv_std = (1.0 / jnp.asarray(std, dtype=jnp.float32)).astype(dtype)

    R, L, _sub = _pick_tiles(rows, hw, itemsize, target_tile_bytes)
    grid_rows = pl.cdiv(rows, R)
    grid_lanes = pl.cdiv(hw, L)
    rows_pad = grid_rows * R
    sliced = grid_rows > 1                 # when True, R % 8 == 0 by construction

    # Row r of the (N*C, H*W) view is (n, c) with r = n*C + c, so tiling the
    # (C,) constants N times gives the per-row value.  Pad to the grid extent
    # so the in-kernel dynamic slice never reads out of bounds (padded rows
    # pair with discarded padded x rows of the last block).
    def _rows_col(v, fill):
        col = jnp.tile(v, N).reshape(rows, 1)
        if rows_pad > rows:
            col = jnp.concatenate(
                [col, jnp.full((rows_pad - rows, 1), fill, dtype=dtype)], axis=0)
        return col

    mean_rows = _rows_col(mean, 0)
    inv_std_rows = _rows_col(inv_std, 1)

    # Lane-dense view: last dim H*W maps to lanes.
    x2 = x.reshape(rows, hw)

    kernel = functools.partial(_normalize_kernel, block_rows=R, sliced=sliced)

    out2 = pl.pallas_call(
        kernel,
        out_shape=jax.ShapeDtypeStruct((rows, hw), dtype),
        grid_spec=pl.GridSpec(
            grid=(grid_rows, grid_lanes),
            in_specs=[
                # Grid-resident per-row constants (a few KiB): DMA'd once.
                pl.BlockSpec((rows_pad, 1), lambda i, j: (0, 0)),
                pl.BlockSpec((rows_pad, 1), lambda i, j: (0, 0)),
                pl.BlockSpec((R, L), lambda i, j: (i, j)),
            ],
            out_specs=pl.BlockSpec((R, L), lambda i, j: (i, j)),
        ),
        compiler_params=pltpu.CompilerParams(
            dimension_semantics=("parallel", "parallel"),
        ),
        cost_estimate=pl.CostEstimate(
            flops=2 * rows * hw,
            transcendentals=0,
            bytes_accessed=2 * rows * hw * itemsize,
        ),
        input_output_aliases={2: 0} if donate_x else {},
    )(mean_rows, inv_std_rows, x2)

    return out2.reshape(N, C, H, W)


if __name__ == "__main__":
    key = jax.random.PRNGKey(0)

    # Primary check: small NCHW image batch matching the module's forward.
    N, C, H, W = 2, 4, 16, 16
    x = jax.random.uniform(key, (N, C, H, W), dtype=jnp.float32)
    mean = jnp.array([0.485, 0.456, 0.406, 0.5], dtype=jnp.float32)
    std = jnp.array([0.229, 0.224, 0.225, 0.25], dtype=jnp.float32)

    out = jax.block_until_ready(normalize(x, mean, std))
    ref = (x - mean[None, :, None, None]) / std[None, :, None, None]
    assert out.shape == (N, C, H, W)
    assert jnp.allclose(out, ref, atol=1e-5, rtol=1e-5)

    # Secondary check: tiny tile target forces multi-block row + lane tiling
    # (partial last row block, resident-constant dynamic slice, lane blocking)
    # so the optimized large-shape paths are exercised at small shapes.
    N2, C2, H2, W2 = 3, 4, 32, 32
    x_b = jax.random.normal(jax.random.PRNGKey(1), (N2, C2, H2, W2), jnp.float32)
    mean_b = jnp.linspace(-0.5, 0.5, C2, dtype=jnp.float32)
    std_b = jnp.linspace(0.5, 2.0, C2, dtype=jnp.float32)
    out_b = jax.block_until_ready(
        normalize(x_b, mean_b, std_b, target_tile_bytes=16 * 1024))
    ref_b = (x_b - mean_b[None, :, None, None]) / std_b[None, :, None, None]
    assert jnp.allclose(out_b, ref_b, atol=1e-5, rtol=1e-5)

    print("KERNEL_OK")
</pallas_src>

<mosaic_0001>
module attributes {stable_mosaic.version = 11 : i64} {
  func.func @_normalize_kernel(%arg0: i32, %arg1: i32, %arg2: memref<8x1xf32, #tpu.memory_space<vmem>>, %arg3: memref<8x1xf32, #tpu.memory_space<vmem>>, %arg4: memref<8x256xf32, #tpu.memory_space<vmem>>, %arg5: memref<8x256xf32, #tpu.memory_space<vmem>>) attributes {dimension_semantics = [#tpu.dimension_semantics<parallel>, #tpu.dimension_semantics<parallel>], iteration_bounds = array<i64: 1, 1>, scalar_prefetch = 0 : i64, scratch_operands = 0 : i64, tpu.core_type = #tpu.core_type<tc>, window_params = [{pipeline_mode = #tpu.pipeline_mode<synchronous>, transform_indices = @transform_0, window_bounds = array<i64: 8, 1>}, {pipeline_mode = #tpu.pipeline_mode<synchronous>, transform_indices = @transform_1, window_bounds = array<i64: 8, 1>}, {transform_indices = @transform_2, window_bounds = array<i64: 8, 256>}, {transform_indices = @transform_3, window_bounds = array<i64: 8, 256>}]} {
    %c0 = arith.constant 0 : index
    %c0_0 = arith.constant 0 : index
    %0 = vector.load %arg2[%c0, %c0_0] : memref<8x1xf32, #tpu.memory_space<vmem>>, vector<8x1xf32>
    %c0_1 = arith.constant 0 : index
    %c0_2 = arith.constant 0 : index
    %1 = vector.load %arg3[%c0_1, %c0_2] : memref<8x1xf32, #tpu.memory_space<vmem>>, vector<8x1xf32>
    %c0_3 = arith.constant 0 : index
    %c0_4 = arith.constant 0 : index
    %2 = vector.load %arg4[%c0_3, %c0_4] : memref<8x256xf32, #tpu.memory_space<vmem>>, vector<8x256xf32>
    %3 = vector.broadcast %0 : vector<8x1xf32> to vector<8x256xf32>
    %4 = arith.subf %2, %3 : vector<8x256xf32>
    %5 = vector.broadcast %1 : vector<8x1xf32> to vector<8x256xf32>
    %6 = arith.mulf %4, %5 : vector<8x256xf32>
    %c0_5 = arith.constant 0 : index
    %c0_6 = arith.constant 0 : index
    %7 = vector.load %arg5[%c0_5, %c0_6] : memref<8x256xf32, #tpu.memory_space<vmem>>, vector<8x256xf32>
    tpu.vector_store %arg5[%c0_5, %c0_6], %6 {strides = array<i32>} : memref<8x256xf32, #tpu.memory_space<vmem>>, vector<8x256xf32>,
    return
  }
  func.func @transform_0(%arg0: i32, %arg1: i32) -> (i32, i32) {
    %c0_i32 = arith.constant 0 : i32
    %c0_i32_0 = arith.constant 0 : i32
    %c0_i32_1 = arith.constant 0 : i32
    return %c0_i32, %c0_i32_0 : i32, i32
  }
  func.func @transform_1(%arg0: i32, %arg1: i32) -> (i32, i32) {
    %c0_i32 = arith.constant 0 : i32
    %c0_i32_0 = arith.constant 0 : i32
    %c0_i32_1 = arith.constant 0 : i32
    return %c0_i32, %c0_i32_0 : i32, i32
  }
  func.func @transform_2(%arg0: i32, %arg1: i32) -> (i32, i32) {
    %c0_i32 = arith.constant 0 : i32
    return %arg0, %arg1 : i32, i32
  }
  func.func @transform_3(%arg0: i32, %arg1: i32) -> (i32, i32) {
    %c0_i32 = arith.constant 0 : i32
    return %arg0, %arg1 : i32, i32
  }
}

</mosaic_0001>

<bundles_post_ra>
// kernel: tpu_custom_call.1
= control target key start
LH: loop header
LB: loop body
LE: loop exit
PB: predicated region body
PF: predicated region fallthrough
CT: control target
= control target key end

     0   :  { %v74_v1 = vmov 0   ;;  %s111_s0 = inlined_call_operand.vmem [shape: f32[8,1], index: 0, kind: input, shape index: {}]   ;;  %s112_s1 = inlined_call_operand.vmem [shape: f32[8,1], index: 1, kind: input, shape index: {}]   ;;  %s113_s2 = inlined_call_operand.vmem [shape: f32[8,256], index: 2, kind: input, shape index: {}]   ;;  %s114_s3 = inlined_call_operand.hbm [shape: f32[8,256], index: 3, kind: output, shape index: {}]  }
   0x1   :  { %v15_v0 = vld [vmem:[%s111_s0] sm:$0xff]  ;;  %51 = vset.pattern.permute.xlu0 %v74_v1 }
   0x2   :  { %8 = vsyncpa [#allocation3], 0  ;;  %21 = vperm.xlu0 %51, %v15_v0   ;;  %v16_v2 = vld [vmem:[%s112_s1] sm:$0xff]  ;;  %v18_v4 = vld [vmem:[%s113_s2 + $0x8] sm:$0xff]  ;;  %s75_s20 = smov [#allocation2]  }
   0x3   :  { %v17_v3 = vld [vmem:[%s113_s2] sm:$0xff]  ;;  %s41_s0 = sshll.u32 %s75_s20, 4  ;;  %s42_s0 = int_to_ptr.vmem [resolvable:$true] %s41_s0 }
   0x4   :  { %s52_s1 = scalar_lea.vmem %s42_s0, 256  ;;  %p57_p1 = scmp.lt.s32.totalorder %s42_s0, %s42_s0 }
   0x5   :  { %p53_p0 = scmp.ne.s32.totalorder %s42_s0, %s52_s1  ;;  %p58_p2 = scmp.lt.s32.totalorder %s52_s1, %s52_s1 }
   0x6   :  { %28 = vperm.xlu0 %51, %v16_v2  }
   0x7   :  { %p59_p3 = por %p58_p2, %p57_p1 }
   0x9   :  { %p60_p4 = pnand %p59_p3, %p53_p0 }
  0x7d   :  { %v22_v5 = vpop.permute.xlu0 %21 }
  0x7e   :  { %v24_v6 = vsub.f32 %v17_v3, %v22_v5  ;;  %v25_v7 = vsub.f32 %v18_v4, %v22_v5 }
  0x81   :  { %v29_v8 = vpop.permute.xlu0 %28 }
  0x82   :  { %v31_v9 = vmul.f32 %v29_v8, %v24_v6  ;;  %v32_v10 = vmul.f32 %v29_v8, %v25_v7 }
  0x84   :  { %33 = vst [vmem:[#allocation2] sm:$0xff] %v31_v9  ;;  %34 = vst [vmem:[#allocation2 + $0x8] sm:$0xff] %v32_v10 }
  0x85   :  { %63 = shalt.err (!%p60_p4)
}
  0x86   :  { %44 = dma.vmem_to_hbm [thread:$0]  %s42_s0, 256, %s114_s3, [#allocation3]  }
  0x87   :  { %72 = dma.done.wait [#allocation3], 256  }
  0x88   :  { %73 = vsyncadd [#allocation3], 4294967040 }
  0x89   :  { %48 = vsyncpa [#allocation3], 1 }

</bundles_post_ra>
